<compile_context>
chip_gen: v7x
topology: tpu7x:2x2x1
jax: 0.10.0
libtpu: 0.0.40
codegen_flags: <defaults>
</compile_context>

<pallas_src>
import functools

import jax
import jax.numpy as jnp
from jax.experimental import pallas as pl
from jax.experimental.pallas import tpu as pltpu


def _se_kernel(x_ref, w1_ref, b1_ref, w2_ref, b2_ref, o_ref, *, inv_hw):
    # x_ref / o_ref: (Bt, C, HWp) block; HWp is zero-padded to a lane multiple.
    bt = x_ref.shape[0]

    # ----- squeeze: global average pool over (zero-padded) spatial lanes -----
    # Accumulate in f32 directly (no full-slab f32 copy), scale by 1/true_HW
    # (Python constant -> VPU multiply, no divide).
    pooled = jnp.sum(x_ref[...], axis=2, keepdims=True,
                     dtype=jnp.float32) * inv_hw
    # pooled: (Bt, C, 1)  -- column layout, C on sublanes.

    # ----- excitation: fc1 (1x1 conv) + relu, batched over Bt -----
    w1 = w1_ref[...]                                            # (Cr, C)
    w1b = jnp.broadcast_to(w1, (bt,) + w1.shape)                # (Bt, Cr, C)
    h = jnp.einsum("brc,bcx->brx", w1b, pooled,
                   preferred_element_type=jnp.float32)          # (Bt, Cr, 1)
    h = jnp.maximum(h + b1_ref[...], 0.0)

    # ----- excitation: fc2 (1x1 conv) + sigmoid -----
    w2 = w2_ref[...]                                            # (C, Cr)
    w2b = jnp.broadcast_to(w2, (bt,) + w2.shape)                # (Bt, C, Cr)
    g = jnp.einsum("bcr,brx->bcx", w2b, h,
                   preferred_element_type=jnp.float32)          # (Bt, C, 1)
    gate = jax.nn.sigmoid(g + b2_ref[...])                      # (Bt, C, 1)

    # ----- scale: re-read x and lane-broadcast the per-channel gate -----
    o_ref[...] = (x_ref[...] * gate).astype(o_ref.dtype)


def se_module(x, w1, b1, w2, b2):
    """SE forward.

    x:  (B, C, H, W)
    w1: (Cr, C)   fc1 1x1-conv weight (Cr = C // reduction)
    b1: (Cr,)     fc1 bias
    w2: (C, Cr)   fc2 1x1-conv weight
    b2: (C,)      fc2 bias
    """
    B, C, H, W = x.shape
    Cr = w1.shape[0]
    HW = H * W

    LANE = 128
    HWp = max(LANE, ((HW + LANE - 1) // LANE) * LANE)

    x_flat = x.reshape(B, C, HW)
    if HWp != HW:
        x_flat = jnp.pad(x_flat, ((0, 0), (0, 0), (0, HWp - HW)))

    # ---- choose a batch tile: ~4 MiB x-block, but keep >= 2 grid steps ----
    itemsize = jnp.dtype(x.dtype).itemsize
    per_image = C * HWp * itemsize
    target_bytes = 4 << 20
    Bt = max(1, min(B, target_bytes // per_image))
    if B >= 2:
        Bt = min(Bt, max(1, B // 2))     # >= 2 parallel steps (megacore / v7x 2 TCs)
    Bt = int(Bt)

    Bp = ((B + Bt - 1) // Bt) * Bt       # pad batch so Bt divides it (pad rows are zero)
    if Bp != B:
        x_flat = jnp.pad(x_flat, ((0, Bp - B), (0, 0), (0, 0)))

    # biases as column vectors for the column-layout excitation
    b1c = b1.reshape(Cr, 1).astype(jnp.float32)
    b2c = b2.reshape(C, 1).astype(jnp.float32)
    w1f = w1.astype(jnp.float32)
    w2f = w2.astype(jnp.float32)

    # ---- explicit VMEM budget: double-buffered in + out blocks + weights ----
    block_bytes = Bt * C * HWp * itemsize
    weight_bytes = (w1f.size + w2f.size + b1c.size + b2c.size) * 4
    vmem_limit = 4 * block_bytes + 4 * weight_bytes + (4 << 20)
    vmem_limit = int(max(16 << 20, min(vmem_limit, 64 << 20)))

    kernel = functools.partial(_se_kernel, inv_hw=1.0 / float(HW))

    out = pl.pallas_call(
        kernel,
        out_shape=jax.ShapeDtypeStruct((Bp, C, HWp), x.dtype),
        grid_spec=pltpu.PrefetchScalarGridSpec(
            num_scalar_prefetch=0,
            grid=(Bp // Bt,),
            in_specs=[
                pl.BlockSpec((Bt, C, HWp), lambda b: (b, 0, 0)),  # x block
                pl.BlockSpec((Cr, C), lambda b: (0, 0)),          # w1
                pl.BlockSpec((Cr, 1), lambda b: (0, 0)),          # b1
                pl.BlockSpec((C, Cr), lambda b: (0, 0)),          # w2
                pl.BlockSpec((C, 1), lambda b: (0, 0)),           # b2
            ],
            out_specs=pl.BlockSpec((Bt, C, HWp), lambda b: (b, 0, 0)),
        ),
        compiler_params=pltpu.CompilerParams(
            dimension_semantics=("parallel",),
            vmem_limit_bytes=vmem_limit,
        ),
    )(x_flat, w1f, b1c, w2f, b2c)

    if Bp != B or HWp != HW:
        out = out[:B, :, :HW]
    return out.reshape(B, C, H, W)


def se_module_ref(x, w1, b1, w2, b2):
    """Pure-JAX reference matching the PyTorch forward."""
    m = jnp.mean(x, axis=(2, 3))                       # (B, C)
    h = jnp.maximum(m @ w1.T + b1.reshape(-1), 0.0)    # (B, Cr)
    s = h @ w2.T + b2.reshape(-1)                      # (B, C)
    gate = jax.nn.sigmoid(s)                           # (B, C)
    return x * gate[:, :, None, None]


if __name__ == "__main__":
    key = jax.random.PRNGKey(0)
    B, C, H, W = 2, 32, 16, 16
    reduction = 16
    Cr = C // reduction

    k_x, k_w1, k_b1, k_w2, k_b2 = jax.random.split(key, 5)
    x = jax.random.normal(k_x, (B, C, H, W), dtype=jnp.float32)
    # 1x1 conv weights == dense matrices on the channel axis.
    w1 = jax.random.normal(k_w1, (Cr, C), dtype=jnp.float32) * 0.1
    b1 = jax.random.normal(k_b1, (Cr,), dtype=jnp.float32) * 0.1
    w2 = jax.random.normal(k_w2, (C, Cr), dtype=jnp.float32) * 0.1
    b2 = jax.random.normal(k_b2, (C,), dtype=jnp.float32) * 0.1

    out = jax.block_until_ready(se_module(x, w1, b1, w2, b2))

    ref = se_module_ref(x, w1, b1, w2, b2)
    assert out.shape == (B, C, H, W)
    assert jnp.allclose(out, ref, atol=1e-5, rtol=1e-5), "mismatch vs reference"

    print("KERNEL_OK")
</pallas_src>

<mosaic_0001>
module attributes {stable_mosaic.version = 11 : i64} {
  func.func @_se_kernel(%arg0: i32, %arg1: memref<1x32x256xf32, #tpu.memory_space<vmem>>, %arg2: memref<2x32xf32, #tpu.memory_space<vmem>>, %arg3: memref<2x1xf32, #tpu.memory_space<vmem>>, %arg4: memref<32x2xf32, #tpu.memory_space<vmem>>, %arg5: memref<32x1xf32, #tpu.memory_space<vmem>>, %arg6: memref<1x32x256xf32, #tpu.memory_space<vmem>>) attributes {dimension_semantics = [#tpu.dimension_semantics<parallel>], iteration_bounds = array<i64: 2>, scalar_prefetch = 0 : i64, scratch_operands = 0 : i64, tpu.core_type = #tpu.core_type<tc>, window_params = [{transform_indices = @transform_0, window_bounds = array<i64: 1, 32, 256>}, {pipeline_mode = #tpu.pipeline_mode<synchronous>, transform_indices = @transform_1, window_bounds = array<i64: 2, 32>}, {pipeline_mode = #tpu.pipeline_mode<synchronous>, transform_indices = @transform_2, window_bounds = array<i64: 2, 1>}, {pipeline_mode = #tpu.pipeline_mode<synchronous>, transform_indices = @transform_3, window_bounds = array<i64: 32, 2>}, {pipeline_mode = #tpu.pipeline_mode<synchronous>, transform_indices = @transform_4, window_bounds = array<i64: 32, 1>}, {transform_indices = @transform_5, window_bounds = array<i64: 1, 32, 256>}]} {
    %c0 = arith.constant 0 : index
    %c0_0 = arith.constant 0 : index
    %c0_1 = arith.constant 0 : index
    %0 = vector.load %arg1[%c0, %c0_0, %c0_1] : memref<1x32x256xf32, #tpu.memory_space<vmem>>, vector<1x32x256xf32>
    %cst = arith.constant dense<0.000000e+00> : vector<1x32xf32>
    %1 = vector.multi_reduction <add>, %0, %cst [2] : vector<1x32x256xf32> to vector<1x32xf32>
    %2 = vector.shape_cast %1 : vector<1x32xf32> to vector<1x32x1xf32>
    %cst_2 = arith.constant 3.906250e-03 : f32
    %3 = vector.broadcast %cst_2 : f32 to vector<1x32x1xf32>
    %4 = arith.mulf %2, %3 : vector<1x32x1xf32>
    %c0_3 = arith.constant 0 : index
    %c0_4 = arith.constant 0 : index
    %5 = vector.load %arg2[%c0_3, %c0_4] : memref<2x32xf32, #tpu.memory_space<vmem>>, vector<2x32xf32>
    %6 = vector.shape_cast %5 : vector<2x32xf32> to vector<1x2x32xf32>
    "tpu.trace_start"() <{level = 10 : i32, message = "brc,bcx->brx"}> : () -> ()
    %cst_5 = arith.constant dense<0.000000e+00> : vector<1x2x1xf32>
    %7 = tpu.matmul %6, %4, %cst_5 {dimension_numbers = #tpu.dot_dimension_numbers<[2], [1], [1], [2], [0, 0, 0, 1, 1, 2], [0], [0]>} : vector<1x2x32xf32>, vector<1x32x1xf32>, vector<1x2x1xf32> -> vector<1x2x1xf32>
    "tpu.trace_stop"() : () -> ()
    %c0_6 = arith.constant 0 : index
    %c0_7 = arith.constant 0 : index
    %8 = vector.load %arg3[%c0_6, %c0_7] : memref<2x1xf32, #tpu.memory_space<vmem>>, vector<2x1xf32>
    %9 = vector.shape_cast %8 : vector<2x1xf32> to vector<1x2x1xf32>
    %10 = arith.addf %7, %9 : vector<1x2x1xf32>
    %cst_8 = arith.constant 0.000000e+00 : f32
    %11 = vector.broadcast %cst_8 : f32 to vector<1x2x1xf32>
    %12 = arith.maximumf %10, %11 : vector<1x2x1xf32>
    %c0_9 = arith.constant 0 : index
    %c0_10 = arith.constant 0 : index
    %13 = vector.load %arg4[%c0_9, %c0_10] : memref<32x2xf32, #tpu.memory_space<vmem>>, vector<32x2xf32>
    %14 = vector.shape_cast %13 : vector<32x2xf32> to vector<1x32x2xf32>
    "tpu.trace_start"() <{level = 10 : i32, message = "bcr,brx->bcx"}> : () -> ()
    %cst_11 = arith.constant dense<0.000000e+00> : vector<1x32x1xf32>
    %15 = tpu.matmul %14, %12, %cst_11 {dimension_numbers = #tpu.dot_dimension_numbers<[2], [1], [1], [2], [0, 0, 0, 1, 1, 2], [0], [0]>} : vector<1x32x2xf32>, vector<1x2x1xf32>, vector<1x32x1xf32> -> vector<1x32x1xf32>
    "tpu.trace_stop"() : () -> ()
    %c0_12 = arith.constant 0 : index
    %c0_13 = arith.constant 0 : index
    %16 = vector.load %arg5[%c0_12, %c0_13] : memref<32x1xf32, #tpu.memory_space<vmem>>, vector<32x1xf32>
    %17 = vector.shape_cast %16 : vector<32x1xf32> to vector<1x32x1xf32>
    %18 = arith.addf %15, %17 : vector<1x32x1xf32>
    %19 = arith.negf %18 : vector<1x32x1xf32>
    %20 = math.exp %19 : vector<1x32x1xf32>
    %cst_14 = arith.constant 1.000000e+00 : f32
    %21 = vector.broadcast %cst_14 : f32 to vector<1x32x1xf32>
    %22 = arith.addf %21, %20 : vector<1x32x1xf32>
    %23 = arith.divf %21, %22 : vector<1x32x1xf32>
    %c0_15 = arith.constant 0 : index
    %c0_16 = arith.constant 0 : index
    %c0_17 = arith.constant 0 : index
    %24 = vector.load %arg1[%c0_15, %c0_16, %c0_17] : memref<1x32x256xf32, #tpu.memory_space<vmem>>, vector<1x32x256xf32>
    %25 = vector.broadcast %23 : vector<1x32x1xf32> to vector<1x32x256xf32>
    %26 = arith.mulf %24, %25 : vector<1x32x256xf32>
    %c0_18 = arith.constant 0 : index
    %c0_19 = arith.constant 0 : index
    %c0_20 = arith.constant 0 : index
    %27 = vector.load %arg6[%c0_18, %c0_19, %c0_20] : memref<1x32x256xf32, #tpu.memory_space<vmem>>, vector<1x32x256xf32>
    tpu.vector_store %arg6[%c0_18, %c0_19, %c0_20], %26 {strides = array<i32>} : memref<1x32x256xf32, #tpu.memory_space<vmem>>, vector<1x32x256xf32>,
    return
  }
  func.func @transform_0(%arg0: i32) -> (i32, i32, i32) {
    %c0_i32 = arith.constant 0 : i32
    %c0_i32_0 = arith.constant 0 : i32
    %c0_i32_1 = arith.constant 0 : i32
    return %arg0, %c0_i32, %c0_i32_0 : i32, i32, i32
  }
  func.func @transform_1(%arg0: i32) -> (i32, i32) {
    %c0_i32 = arith.constant 0 : i32
    %c0_i32_0 = arith.constant 0 : i32
    %c0_i32_1 = arith.constant 0 : i32
    return %c0_i32, %c0_i32_0 : i32, i32
  }
  func.func @transform_2(%arg0: i32) -> (i32, i32) {
    %c0_i32 = arith.constant 0 : i32
    %c0_i32_0 = arith.constant 0 : i32
    %c0_i32_1 = arith.constant 0 : i32
    return %c0_i32, %c0_i32_0 : i32, i32
  }
  func.func @transform_3(%arg0: i32) -> (i32, i32) {
    %c0_i32 = arith.constant 0 : i32
    %c0_i32_0 = arith.constant 0 : i32
    %c0_i32_1 = arith.constant 0 : i32
    return %c0_i32, %c0_i32_0 : i32, i32
  }
  func.func @transform_4(%arg0: i32) -> (i32, i32) {
    %c0_i32 = arith.constant 0 : i32
    %c0_i32_0 = arith.constant 0 : i32
    %c0_i32_1 = arith.constant 0 : i32
    return %c0_i32, %c0_i32_0 : i32, i32
  }
  func.func @transform_5(%arg0: i32) -> (i32, i32, i32) {
    %c0_i32 = arith.constant 0 : i32
    %c0_i32_0 = arith.constant 0 : i32
    %c0_i32_1 = arith.constant 0 : i32
    return %arg0, %c0_i32, %c0_i32_0 : i32, i32, i32
  }
}

</mosaic_0001>

<bundles_post_ra>
// kernel: tpu_custom_call.1
= control target key start
LH: loop header
LB: loop body
LE: loop exit
PB: predicated region body
PF: predicated region fallthrough
CT: control target
= control target key end

     0   :  { %10 = vsyncpa [#allocation3], 0  ;;  %s1108_s0 = inlined_call_operand.hbm [shape: f32[2,32,256], index: 0, kind: input, shape index: {}]   ;;  %s1109_s1 = inlined_call_operand.vmem [shape: f32[2,32], index: 1, kind: input, shape index: {}]   ;;  %s1110_s2 = inlined_call_operand.vmem [shape: f32[2,1], index: 2, kind: input, shape index: {}]   ;;  %s1111_s3 = inlined_call_operand.vmem [shape: f32[32,2], index: 3, kind: input, shape index: {}]   ;;  %s1112_s4 = inlined_call_operand.vmem [shape: f32[32,1], index: 4, kind: input, shape index: {}]   ;;  %s1113_s5 = inlined_call_operand.hbm [shape: f32[2,32,256], index: 5, kind: output, shape index: {}]  }
   0x1   :  { %12 = vsyncpa [#allocation3 + $0x1], 0 }
   0x2   :  { %13 = vsyncpa [#allocation4], 0 }
   0x3   :  { %15 = vsyncpa [#allocation4 + $0x1], 0  ;;  %s880_s18 = smov 0   ;;  %s882_s19 = smov 0  }
   0x4   :  { %s884_s20 = smov 0   ;;  %s886_s21 = smov 0  }
   0x5 LB: > { %s901_s22 = sadd.s32 4294967295, %s838_s21   ;;  %s609_s23 = sadd.s32 4294967294, %s838_s21   ;;  %s838_s21 = sphi %s886_s21, %s1126_s21   ;;  %s834_s20 = sphi %s884_s20, %s1125_s20   ;;  %s830_s19 = sphi %s882_s19, %s1124_s19   ;;  %s826_s18 = sphi %s880_s18, %s1123_s18  }
   0x6   : > { %s905_s24 = sadd.s32 1, %s838_s21   ;;  %s28_s25 = sadd.s32 1, %s834_s20 }
   0x7   : > { %s25_s26 = ssub.s32 %s838_s21, %s905_s24  ;;  %p35_p0 = scmp.ne.s32.totalorder %s834_s20, %s830_s19 }
   0x8   : > { %p26_p1 = scmp.eq.s32.totalorder %s25_s26, 0  ;;  %p36_p2 = scmp.eq.s32.totalorder %s838_s21, 0 }
   0x9   : > { %p41_p3 = scmp.ne.s32.totalorder %s830_s19, %s826_s18  ;;  %p42_p4 = scmp.eq.s32.totalorder %s901_s22, 0 }
   0xa   : > { %s917_s27 = scalar_select %p26_p1, %s834_s20, %s28_s25  }
   0xb   : > { %p919_p5 = por %p36_p2, %p35_p0  ;;  %p923_p6 = por %p42_p4, %p41_p3 }
   0xc   : > { %p149_p7 = scmp.eq.s32.totalorder %s901_s22, 1  ;;  %p155_p8 = scmp.eq.s32.totalorder %s609_s23, 1 }
   0xd   : > { %p682_p10 = scmp.lt.s32.totalorder %s838_s21, 2  ;;  %s187_s7 = sand.u32 1, %s834_s20  }
   0xe   : > { %p930_p11 = por %p149_p7, %p35_p0  ;;  %p934_p12 = por %p155_p8, %p41_p3 }
   0xf   : > { %s633_s8 = sshll.u32 %s838_s21, 10  ;;  %s612_s9 = sshll.u32 %s187_s7, 6 }
  0x10   : > { %s1117_s30 = scalar_select %p930_p11, 1, 0 }
  0x11   : > { %s1118_s6 = scalar_select %p934_p12, 1, 0 }
  0x12   : > { %s943_s12 = scalar_lea.hbm %s1108_s0, %s633_s8  ;;  %s191_s13 = scalar_lea.vmem [#allocation2], %s612_s9 }
  0x13   : > { %s198_s14 = sshll.u32 %s191_s13, 4  ;;  %p947_p13 = pnand %p682_p10, %p919_p5  ;;  %s951_s14 = int_to_ptr.vmem [resolvable:$true] %s198_s14 }
  0x14   : > { %s953_s16 = scalar_lea.sflag [#allocation3], %s187_s7  ;;  %s742_s17 = scalar_lea.hbm %s943_s12, 1024 }
  0x15   : > { %p743_p0 = scmp.ne.s32.totalorder %s943_s12, %s742_s17  ;;  %p744_p1 = pneg %p947_p13 }
  0x16   : > { %s747_s26 = scalar_lea.hbm %s1108_s0, 2048  ;;  %p748_p4 = scmp.lt.u32.totalorder %s943_s12, %s1108_s0 }
  0x17   : > { %p745_p2 = pnand %p744_p1, %p743_p0  ;;  %p749_p5 = scmp.lt.u32.totalorder %s747_s26, %s742_s17 }
  0x18   : > { %p751_p8 = scmp.lt.u32.totalorder %s742_s17, %s943_s12 }
  0x19   : > { %p746_p3 = pneg %p745_p2  ;;  %p750_p7 = por %p749_p5, %p748_p4 }
  0x1b   : > { %p752_p10 = por %p751_p8, %p750_p7 }
  0x1d   : > { %p753_p9 = pnand %p752_p10, %p746_p3 }
  0x1f   : > { %756 = shalt.err (!%p753_p9)
}
  0x20   : > { %s757_s7 = scalar_lea.vmem %s951_s14, 1024  ;;  %s840_s9 = smov [#allocation2]  }
  0x21   : > { %p758_p0 = scmp.ne.s32.totalorder %s951_s14, %s757_s7  ;;  %s762_s10 = sshll.u32 %s840_s9, 4  ;;  %s763_s10 = int_to_ptr.vmem [resolvable:$false] %s762_s10 }
  0x22   : > { %s764_s11 = scalar_lea.vmem %s763_s10, 2048  ;;  %p765_p11 = scmp.lt.s32.totalorder %s951_s14, %s763_s10 }
  0x23   : > { %p760_p2 = pnand %p758_p0, %p744_p1  ;;  %p766_p4 = scmp.lt.s32.totalorder %s764_s11, %s757_s7 }
  0x25   : > { %p761_p12 = pneg %p760_p2  ;;  %p767_p5 = por %p766_p4, %p765_p11 }
  0x27   : > { %p768_p7 = pnand %p767_p5, %p761_p12 }
  0x29   : > { %771 = shalt.err (!%p768_p7)
}
  0x2a   : > { %s841_s13 = smov 256   ;;  %s842_s17 = smov 16  }
  0x2b   : > { %677 = dma.hbm_to_vmem [thread:$0]  (!%p947_p13), %s943_s12, 1024, %s951_s14, %s953_s16, %s841_s13, %s841_s13, %s842_s17  }
  0x2c   : > { %p615_p9 = scmp.ge.s32.totalorder %s838_s21, 1  ;;  %p206_p1 = scmp.lt.s32.totalorder %s838_s21, 3 }
  0x2e   : > { %p207_p3 = pnand %p615_p9, %p206_p1 }
  0x2f   : > { %s984_s23 = sand.u32 (!%p207_p3), 1, %s830_s19  }
  0x30   : > { %210 = sbr.rel (%p207_p3) target bundleno = 829 (0x33d), region = 40  ;;  %s616_s25 = sshll.u32 (!%p207_p3), %s984_s23, 6 }
  0x31   : > { %s213_s26 = scalar_lea.sflag (!%p207_p3), [#allocation3], %s984_s23  ;;  %s216_s28 = scalar_lea.vmem (!%p207_p3), [#allocation2], %s616_s25 }
  0x37   : > { %817 = dma.done.wait (%p923_p6), %s213_s26, 1024  }
  0x38   : > { %819 = vsyncadd (%p923_p6), %s213_s26, 4294966272  ;;  %v994_v0 = vld [vmem:[%s216_s28 + $0x20] sm:$0xff]  ;;  %v996_v1 = vld [vmem:[%s216_s28 + $0x28] sm:$0xff]  ;;  %v843_v12 = vmov 0.0|0.0   ;;  %vm844_vm0 = vmmov 0   ;;  %v845_v13 = vmov 0.0  }
  0x39   : > { %v998_v2 = vld [vmem:[%s216_s28] sm:$0xff]  ;;  %v257_v3 = vadd.f32 %v996_v1, %v994_v0  ;;  %v1002_v4 = vld [vmem:[%s216_s28 + $0x8] sm:$0xff]  ;;  %v1004_v5 = vld [vmem:[%s216_s28 + $0x30] sm:$0xff]  ;;  %664 = vmatprep.subr.bf16.mxu0 %v843_v12  ;;  %653 = vmatprep.mubr.msk.f32.mxu0 %vm844_vm0, %v845_v13  ;;  %vm269_vm1 = vcmask 261120   ;;  %vm352_vm2 = vcmask 15360   ;;  %vm365_vm3 = vcmask 1041408  }
  0x3a   : > { %v1006_v6 = vld [vmem:[%s216_s28 + $0x38] sm:$0xff]  ;;  %v251_v7 = vadd.f32 %v1002_v4, %v998_v2  ;;  %v1010_v8 = vld [vmem:[%s216_s28 + $0x10] sm:$0xff]  ;;  %v267_v24 = vld [vmem:[%s1109_s1] sm:$0x3]  ;;  %v846_v34 = vmov 0   ;;  %s242_s7 = scalar_lea.vmem [#allocation5], %s616_s25 }
  0x3b   : > { %v1012_v9 = vld [vmem:[%s216_s28 + $0x18] sm:$0xff]  ;;  %258 = vadd.xlane.f32.xlu1 %v257_v3  ;;  %v260_v10 = vadd.f32 %v1006_v6, %v1004_v5  ;;  %v344_v25 = vld [vmem:[%s1111_s3] sm:$0xff]  ;;  %v345_v31 = vld [vmem:[%s1111_s3 + $0x8] sm:$0xff]  ;;  %724 = vset.pattern.permute.xlu0 %v846_v34  ;;  %s536_s9 = sshll.u32 %s242_s7, 4  ;;  %s634_s10 = sshll.u32 %s901_s22, 10  ;;  %s1057_s9 = int_to_ptr.vmem [resolvable:$true] %s536_s9 }
  0x3c   : > { %252 = vadd.xlane.f32.xlu0 %v251_v7  ;;  %v254_v11 = vadd.f32 %v1012_v9, %v1010_v8  ;;  %658 = vmatprep.mubr.msk.f32.mxu1 %vm352_vm2, %v344_v25  ;;  %v268_v26 = vld [vmem:[%s1110_s2] sm:$0x3]  ;;  %v346_v32 = vld [vmem:[%s1111_s3 + $0x10] sm:$0xff]  ;;  %v347_v33 = vld [vmem:[%s1111_s3 + $0x18] sm:$0xff]  ;;  %s1062_s13 = scalar_lea.hbm %s1113_s5, %s634_s10  ;;  %s523_s22 = scalar_lea.sflag [#allocation4], %s984_s23 }
  0x3d   : > { %725 = vset.pattern.permute.xlu1 %v846_v34  ;;  %v349_v35 = vld [vmem:[%s1112_s4 + $0x8] sm:$0xff]  ;;  %v348_v36 = vld [vmem:[%s1112_s4] sm:$0xff]  ;;  %v351_v41 = vld [vmem:[%s1112_s4 + $0x18] sm:$0xff]  ;;  %s772_s17 = scalar_lea.vmem %s1057_s9, 1024  ;;  %p1120_p11 = scmp.ne.s32.totalorder %s1117_s30, 0 }
  0x3e   : > { %v350_v43 = vld [vmem:[%s1112_s4 + $0x10] sm:$0xff]  ;;  %p773_p6 = scmp.ne.s32.totalorder %s1057_s9, %s772_s17  ;;  %s847_s26 = smov [#allocation5]  }
  0x3f   : > { %261 = vadd.xlane.f32.xlu1 %v260_v10  ;;  %s776_s28 = sshll.u32 %s847_s26, 4  ;;  %s777_s28 = int_to_ptr.vmem [resolvable:$false] %s776_s28 }
  0x40   : > { %255 = vadd.xlane.f32.xlu0 %v254_v11  ;;  %p774_p12 = pnand %p773_p6, %p1120_p11  ;;  %s778_s29 = scalar_lea.vmem %s777_s28, 2048 }
  0x41   : > { %p779_p8 = scmp.lt.s32.totalorder %s1057_s9, %s777_s28  ;;  %p780_p10 = scmp.lt.s32.totalorder %s778_s29, %s772_s17 }
  0x42   : > { %p775_p13 = pneg %p774_p12 }
  0x43   : > { %p781_p0 = por %p780_p10, %p779_p8 }
  0x45   : > { %p782_p2 = pnand %p781_p0, %p775_p13 }
  0xc8   : > { %v259_v14 = vpop.xlane.xlu1 %258 }
  0xc9   : > { %v253_v15 = vpop.xlane.xlu0 %252  ;;  %v265_v20 = vmul.f32 0.00390625, %v259_v14 }
  0xca   : > { %v263_v18 = vmul.f32 0.00390625, %v253_v15 }
  0xcc   : > { %v262_v16 = vpop.xlane.xlu1 %261 }
  0xcd   : > { %v256_v17 = vpop.xlane.xlu0 %255  ;;  %v266_v21 = vmul.f32 0.00390625, %v262_v16 }
  0xce   : > { %v264_v19 = vmul.f32 0.00390625, %v256_v17 }
  0xcf   : > { %v668_v23 = vpack.c.bf16 %v266_v21, %v265_v20 }
  0xd0   : > { %v665_v22 = vpack.c.bf16 %v264_v19, %v263_v18 }
  0xd2   : > { %666 = vmatpush3.bf16.msra.mxu0 %v665_v22 }
  0xd3   : > { %667 = vmatprep.subr.bf16.mxu0 %v843_v12 }
  0xd6   : > { %669 = vmatpush3.bf16.msra.mxu0 %v668_v23 }
  0xd9   : > { %654 = vmatmul.mubr.msk.f32.vlgmr.msra.gmra.mrb[0].mxu0 %vm269_vm1, %v267_v24 }
 0x1ac   : > { %v339_v27 = vpop.f32.mrb[0].mxu0 }
 0x1ad   : > { %v340_v28 = vadd.f32 %v339_v27, %v268_v26  ;;  %v655_v29 = vpop.f32.mrb[1].mxu0 }
 0x1af   : > { %v343_v30 = vmax.f32 %v340_v28, 0.0 }
 0x1b1   : > { %656 = vmatprep.subr.msk.mxu1 %vm365_vm3, %v343_v30 }
 0x1b2   : > { %657 = vmatpush3.msk.msra.mxu1 %vm365_vm3, %v343_v30 }
 0x1b3   : > { %659 = vmatmul.mubr.msk.f32.vlgmr.msra.gmra.mrb[0].mxu1 %vm352_vm2, %v345_v31 }
 0x1b4   : > { %661 = vmatprep.mubr.msk.f32.mxu1 %vm352_vm2, %v346_v32 }
 0x1b7   : > { %662 = vmatmul.mubr.msk.f32.gmra.mrb[2].mxu1 %vm352_vm2, %v347_v33 }
 0x286   : > { %v660_v37 = vpop.f32.mrb[0].mxu1 }
 0x287   : > { %v441_v38 = vadd.f32 %v660_v37, %v349_v35  ;;  %v435_v39 = vpop.f32.mrb[1].mxu1 }
 0x288   : > { %v436_v40 = vadd.f32 %v435_v39, %v348_v36 }
 0x289   : > { %v625_v42 = vmul.f32 -1.442695, %v441_v38 }
 0x28a   : > { %v624_v44 = vmul.f32 -1.442695, %v436_v40  ;;  %v663_v45 = vpop.f32.mrb[2].mxu1 }
 0x28b   : > { %726 = vpow2.f32 %v625_v42  ;;  %v451_v46 = vadd.f32 %v663_v45, %v351_v41  ;;  %v445_v47 = vpop.f32.mrb[3].mxu1 }
 0x28c   : > { %728 = vpow2.f32 %v624_v44  ;;  %v446_v48 = vadd.f32 %v445_v47, %v350_v43 }
 0x28d   : > { %v627_v49 = vmul.f32 -1.442695, %v451_v46 }
 0x28e   : > { %v626_v50 = vmul.f32 -1.442695, %v446_v48 }
 0x28f   : > { %730 = vpow2.f32 %v627_v49 }
 0x290   : > { %732 = vpow2.f32 %v626_v50 }
 0x295   : > { %v727_v51 = vpop.eup %726 }
 0x296   : > { %v729_v52 = vpop.eup %728  ;;  %v467_v53 = vadd.f32 1.0, %v727_v51 }
 0x297   : > { %v466_v54 = vadd.f32 1.0, %v729_v52 }
 0x298   : > { %734 = vrcp.f32 %v467_v53 }
 0x299   : > { %v731_v55 = vpop.eup %730  ;;  %736 = vrcp.f32 %v466_v54 }
 0x29a   : > { %v733_v56 = vpop.eup %732  ;;  %v469_v58 = vadd.f32 1.0, %v731_v55 }
 0x29b   : > { %v468_v57 = vadd.f32 1.0, %v733_v56 }
 0x29d   : > { %738 = vrcp.f32 %v468_v57 }
 0x29e   : > { %740 = vrcp.f32 %v469_v58 }
 0x2a2   : > { %v735_v59 = vpop.eup %734 }
 0x2a3   : > { %v737_v60 = vpop.eup %736  ;;  %493 = vperm.xlu1 %725, %v735_v59  }
 0x2a4   : > { %488 = vperm.xlu0 %724, %v737_v60  }
 0x2a7   : > { %v739_v61 = vpop.eup %738 }
 0x2a8   : > { %498 = vperm.xlu1 %725, %v739_v61   ;;  %v741_v62 = vpop.eup %740 }
 0x2ac   : > { %503 = vperm.xlu1 %725, %v741_v62  }
 0x322   : > { %v494_v63 = vpop.permute.xlu1 %493 }
 0x323   : > { %v508_v3 = vmul.f32 %v494_v63, %v1010_v8  ;;  %v509_v7 = vmul.f32 %v494_v63, %v1012_v9  ;;  %v489_v10 = vpop.permute.xlu0 %488 }
 0x324   : > { %v506_v11 = vmul.f32 %v489_v10, %v998_v2  ;;  %v507_v12 = vmul.f32 %v489_v10, %v1002_v4 }
 0x325   : > { %516 = vst [vmem:[%s242_s7 + $0x10] sm:$0xff] %v508_v3  ;;  %517 = vst [vmem:[%s242_s7 + $0x18] sm:$0xff] %v509_v7 }
 0x326   : > { %514 = vst [vmem:[%s242_s7] sm:$0xff] %v506_v11  ;;  %515 = vst [vmem:[%s242_s7 + $0x8] sm:$0xff] %v507_v12 }
 0x327   : > { %v499_v13 = vpop.permute.xlu1 %498 }
 0x328   : > { %v510_v14 = vmul.f32 %v499_v13, %v994_v0  ;;  %v511_v8 = vmul.f32 %v499_v13, %v996_v1 }
 0x32a   : > { %518 = vst [vmem:[%s242_s7 + $0x20] sm:$0xff] %v510_v14  ;;  %519 = vst [vmem:[%s242_s7 + $0x28] sm:$0xff] %v511_v8 }
 0x32b   : > { %v504_v2 = vpop.permute.xlu1 %503 }
 0x32c   : > { %v512_v4 = vmul.f32 %v504_v2, %v1004_v5  ;;  %v513_v0 = vmul.f32 %v504_v2, %v1006_v6 }
 0x32e   : > { %520 = vst [vmem:[%s242_s7 + $0x30] sm:$0xff] %v512_v4  ;;  %521 = vst [vmem:[%s242_s7 + $0x38] sm:$0xff] %v513_v0 }
 0x32f   : > { %785 = shalt.err (!%p782_p2)
}
 0x330   : > { %s786_s12 = scalar_lea.hbm %s1062_s13, 1024  ;;  %s790_s16 = scalar_lea.hbm %s1113_s5, 2048 }
 0x331   : > { %p787_p4 = scmp.ne.s32.totalorder %s1062_s13, %s786_s12  ;;  %p791_p9 = scmp.lt.u32.totalorder %s1062_s13, %s1113_s5 }
 0x332   : > { %p792_p1 = scmp.lt.u32.totalorder %s790_s16, %s786_s12  ;;  %p794_p6 = scmp.lt.u32.totalorder %s786_s12, %s1062_s13 }
 0x333   : > { %p788_p5 = pnand %p787_p4, %p1120_p11 }
 0x334   : > { %p793_p3 = por %p792_p1, %p791_p9 }
 0x335   : > { %p789_p7 = pneg %p788_p5 }
 0x336   : > { %p795_p12 = por %p794_p6, %p793_p3 }
 0x338   : > { %p796_p13 = pnand %p795_p12, %p789_p7 }
 0x33a   : > { %799 = shalt.err (!%p796_p13)
}
 0x33b   : > { %s848_s10 = smov 256   ;;  %s849_s25 = smov 16  }
 0x33c   : > { %672 = dma.vmem_to_hbm [thread:$0]  (%p1120_p11), %s1057_s9, 1024, %s1062_s13, %s523_s22, %s848_s10, %s848_s10, %s849_s25  }
 0x33d PF: > { %s551_s11 = sand.u32 1, %s826_s18   ;;  %p1121_p8 = scmp.ne.s32.totalorder %s1118_s6, 0 }
 0x33e   : > { %p1122_p10 = scmp.ge.s32.totalorder %s838_s21, 2  ;;  %s552_s17 = scalar_lea.sflag [#allocation4], %s551_s11 }
 0x340   : > { %p679_p0 = pnand %p1122_p10, %p1121_p8 }
 0x342   : > { %821 = dma.done.wait (!%p679_p0), %s552_s17, 1024  }
 0x343   : > { %823 = vsyncadd (!%p679_p0), %s552_s17, 4294966272  ;;  %p18_p2 = scmp.ge.s32.totalorder %s905_s24, 4   ;;  %s1123_s18 = smov %s830_s19 }
 0x344   : > { %s1124_s19 = smov %s834_s20  ;;  %s1125_s20 = smov %s917_s27 }
 0x345   : > { %s1126_s21 = smov %s905_s24  ;;  %20 = sbr.rel (!%p18_p2) target bundleno = 5 (0x5), region = 85 }
 0x34c   :  { %557 = vsyncpa [#allocation3], 1 }
 0x34d   :  { %559 = vsyncpa [#allocation3 + $0x1], 1 }
 0x34e   :  { %560 = vsyncpa [#allocation4], 1 }
 0x34f   :  { %562 = vsyncpa [#allocation4 + $0x1], 1 }

</bundles_post_ra>
